<compile_context>
chip_gen: v6e
topology: v6e:2x2x1
jax: 0.10.0
libtpu: 0.0.40
codegen_flags: <defaults>
</compile_context>

<pallas_src>
import functools

import jax
import jax.numpy as jnp
from jax.experimental import pallas as pl
from jax.experimental.pallas import tpu as pltpu

HIDDEN1 = 32
HIDDEN2 = 64


def tree_predictor_kernel(x_ref, w1_ref, b1_ref, w2_ref, b2_ref,
                          w3_ref, b3_ref, o_ref):
    # fc1 + ReLU (f32 MXU dot, f32 accumulation).
    h1 = jnp.dot(x_ref[...], w1_ref[...],
                 preferred_element_type=jnp.float32) + b1_ref[...]
    h1 = jnp.maximum(h1, 0.0)
    # fc2 + ReLU
    h2 = jnp.dot(h1, w2_ref[...],
                 preferred_element_type=jnp.float32) + b2_ref[...]
    h2 = jnp.maximum(h2, 0.0)
    # fc3 + exact sigmoid over only the real out_size columns.
    logits = jnp.dot(h2, w3_ref[...],
                     preferred_element_type=jnp.float32) + b3_ref[...]
    o_ref[...] = 1.0 / (1.0 + jnp.exp(-logits))


@functools.partial(jax.jit, static_argnames=("tile_m",))
def tree_predictor(x, params, *, tile_m=1024):
    """Forward pass of TreePredictor.  x: (batch, input_size) f32."""
    w1, b1, w2, b2, w3, b3 = params
    batch, in_size = x.shape
    out_size = w3.shape[1]

    # Batch tile: multiple of 8 sublanes, at most tile_m.
    tm = max(8, (min(tile_m, batch) // 8) * 8)
    # v7x megacore: keep >= 2 grid steps whenever the batch allows it so the
    # "parallel" batch axis can actually be split across the 2 TensorCores.
    half = ((batch // 2) // 8) * 8
    if half >= 8:
        tm = min(tm, half)
    grid = (pl.cdiv(batch, tm),)  # ragged tail handled by Pallas (masked store)

    def resident(shape):
        # Full-shape block, constant index_map -> stays pinned in VMEM.
        return pl.BlockSpec(shape, lambda i: (0, 0))

    in_specs = [
        pl.BlockSpec((tm, in_size), lambda i: (i, 0)),   # x tile (pipelined)
        resident(w1.shape), resident(b1.shape),
        resident(w2.shape), resident(b2.shape),
        resident(w3.shape), resident(b3.shape),
    ]
    # Last dim == full array dim (out_size), second-to-last is a multiple of 8.
    out_spec = pl.BlockSpec((tm, out_size), lambda i: (i, 0))

    flops = 2 * batch * (in_size * HIDDEN1
                         + HIDDEN1 * HIDDEN2
                         + HIDDEN2 * out_size)
    bytes_accessed = 4 * (x.size + w1.size + b1.size + w2.size + b2.size
                          + w3.size + b3.size + batch * out_size)
    cost = pl.CostEstimate(flops=flops,
                           transcendentals=batch * out_size,
                           bytes_accessed=bytes_accessed)

    return pl.pallas_call(
        tree_predictor_kernel,
        out_shape=jax.ShapeDtypeStruct((batch, out_size), jnp.float32),
        grid=grid,
        in_specs=in_specs,
        out_specs=out_spec,
        compiler_params=pltpu.CompilerParams(
            dimension_semantics=("parallel",)),
        cost_estimate=cost,
    )(x, w1, b1, w2, b2, w3, b3)


def init_params(key, input_size, output_size):
    """Deterministic init mirroring nn.Linear's U(-1/sqrt(fan_in), +1/sqrt(fan_in)).

    Weights are stored (in_features, out_features); biases as (1, out_features).
    """
    dims = [(input_size, HIDDEN1), (HIDDEN1, HIDDEN2), (HIDDEN2, output_size)]
    params = []
    keys = jax.random.split(key, len(dims) * 2)
    for i, (fan_in, fan_out) in enumerate(dims):
        bound = 1.0 / (fan_in ** 0.5)
        w = jax.random.uniform(keys[2 * i], (fan_in, fan_out),
                               minval=-bound, maxval=bound, dtype=jnp.float32)
        b = jax.random.uniform(keys[2 * i + 1], (1, fan_out),
                               minval=-bound, maxval=bound, dtype=jnp.float32)
        params.extend([w, b])
    return tuple(params)


if __name__ == "__main__":
    input_size = 16
    output_size = 4
    batch = 8

    key = jax.random.PRNGKey(0)
    k_x, k_p = jax.random.split(key)
    x = jax.random.normal(k_x, (batch, input_size), dtype=jnp.float32)
    params = init_params(k_p, input_size, output_size)

    out = tree_predictor(x, params)
    jax.block_until_ready(out)

    # Pure-JAX f32 reference of the same forward pass.
    w1, b1, w2, b2, w3, b3 = params
    ref = jax.nn.sigmoid(
        jnp.maximum(jnp.maximum(x @ w1 + b1, 0.0) @ w2 + b2, 0.0) @ w3 + b3)

    assert out.shape == (batch, output_size)
    # Full f32 path with exact sigmoid -> tight tolerance vs the reference.
    assert jnp.allclose(out, ref, atol=1e-4, rtol=1e-4), (
        float(jnp.max(jnp.abs(out - ref))))

    print("KERNEL_OK")
</pallas_src>

<mosaic_0001>
module attributes {stable_mosaic.version = 11 : i64} {
  func.func @tree_predictor_kernel(%arg0: i32, %arg1: memref<8x16xf32, #tpu.memory_space<vmem>>, %arg2: memref<16x32xf32, #tpu.memory_space<vmem>>, %arg3: memref<1x32xf32, #tpu.memory_space<vmem>>, %arg4: memref<32x64xf32, #tpu.memory_space<vmem>>, %arg5: memref<1x64xf32, #tpu.memory_space<vmem>>, %arg6: memref<64x4xf32, #tpu.memory_space<vmem>>, %arg7: memref<1x4xf32, #tpu.memory_space<vmem>>, %arg8: memref<8x4xf32, #tpu.memory_space<vmem>>) attributes {dimension_semantics = [#tpu.dimension_semantics<parallel>], iteration_bounds = array<i64: 1>, scalar_prefetch = 0 : i64, scratch_operands = 0 : i64, tpu.core_type = #tpu.core_type<tc>, window_params = [{transform_indices = @transform_0, window_bounds = array<i64: 8, 16>}, {pipeline_mode = #tpu.pipeline_mode<synchronous>, transform_indices = @transform_1, window_bounds = array<i64: 16, 32>}, {pipeline_mode = #tpu.pipeline_mode<synchronous>, transform_indices = @transform_2, window_bounds = array<i64: 1, 32>}, {pipeline_mode = #tpu.pipeline_mode<synchronous>, transform_indices = @transform_3, window_bounds = array<i64: 32, 64>}, {pipeline_mode = #tpu.pipeline_mode<synchronous>, transform_indices = @transform_4, window_bounds = array<i64: 1, 64>}, {pipeline_mode = #tpu.pipeline_mode<synchronous>, transform_indices = @transform_5, window_bounds = array<i64: 64, 4>}, {pipeline_mode = #tpu.pipeline_mode<synchronous>, transform_indices = @transform_6, window_bounds = array<i64: 1, 4>}, {transform_indices = @transform_7, window_bounds = array<i64: 8, 4>}]} {
    %c0 = arith.constant 0 : index
    %c0_0 = arith.constant 0 : index
    %0 = vector.load %arg1[%c0, %c0_0] : memref<8x16xf32, #tpu.memory_space<vmem>>, vector<8x16xf32>
    %c0_1 = arith.constant 0 : index
    %c0_2 = arith.constant 0 : index
    %1 = vector.load %arg2[%c0_1, %c0_2] : memref<16x32xf32, #tpu.memory_space<vmem>>, vector<16x32xf32>
    %cst = arith.constant dense<0.000000e+00> : vector<8x32xf32>
    %2 = tpu.matmul %0, %1, %cst {dimension_numbers = #tpu.dot_dimension_numbers<[1], [0], [0], [1], [0, 0, 1, 1], [], []>} : vector<8x16xf32>, vector<16x32xf32>, vector<8x32xf32> -> vector<8x32xf32>
    %c0_3 = arith.constant 0 : index
    %c0_4 = arith.constant 0 : index
    %3 = vector.load %arg3[%c0_3, %c0_4] : memref<1x32xf32, #tpu.memory_space<vmem>>, vector<1x32xf32>
    %4 = vector.broadcast %3 : vector<1x32xf32> to vector<8x32xf32>
    %5 = arith.addf %2, %4 : vector<8x32xf32>
    %cst_5 = arith.constant 0.000000e+00 : f32
    %6 = vector.broadcast %cst_5 : f32 to vector<8x32xf32>
    %7 = arith.maximumf %5, %6 : vector<8x32xf32>
    %c0_6 = arith.constant 0 : index
    %c0_7 = arith.constant 0 : index
    %8 = vector.load %arg4[%c0_6, %c0_7] : memref<32x64xf32, #tpu.memory_space<vmem>>, vector<32x64xf32>
    %cst_8 = arith.constant dense<0.000000e+00> : vector<8x64xf32>
    %9 = tpu.matmul %7, %8, %cst_8 {dimension_numbers = #tpu.dot_dimension_numbers<[1], [0], [0], [1], [0, 0, 1, 1], [], []>} : vector<8x32xf32>, vector<32x64xf32>, vector<8x64xf32> -> vector<8x64xf32>
    %c0_9 = arith.constant 0 : index
    %c0_10 = arith.constant 0 : index
    %10 = vector.load %arg5[%c0_9, %c0_10] : memref<1x64xf32, #tpu.memory_space<vmem>>, vector<1x64xf32>
    %11 = vector.broadcast %10 : vector<1x64xf32> to vector<8x64xf32>
    %12 = arith.addf %9, %11 : vector<8x64xf32>
    %cst_11 = arith.constant 0.000000e+00 : f32
    %13 = vector.broadcast %cst_11 : f32 to vector<8x64xf32>
    %14 = arith.maximumf %12, %13 : vector<8x64xf32>
    %c0_12 = arith.constant 0 : index
    %c0_13 = arith.constant 0 : index
    %15 = vector.load %arg6[%c0_12, %c0_13] : memref<64x4xf32, #tpu.memory_space<vmem>>, vector<64x4xf32>
    %cst_14 = arith.constant dense<0.000000e+00> : vector<8x4xf32>
    %16 = tpu.matmul %14, %15, %cst_14 {dimension_numbers = #tpu.dot_dimension_numbers<[1], [0], [0], [1], [0, 0, 1, 1], [], []>} : vector<8x64xf32>, vector<64x4xf32>, vector<8x4xf32> -> vector<8x4xf32>
    %c0_15 = arith.constant 0 : index
    %c0_16 = arith.constant 0 : index
    %17 = vector.load %arg7[%c0_15, %c0_16] : memref<1x4xf32, #tpu.memory_space<vmem>>, vector<1x4xf32>
    %18 = vector.broadcast %17 : vector<1x4xf32> to vector<8x4xf32>
    %19 = arith.addf %16, %18 : vector<8x4xf32>
    %cst_17 = arith.constant 0.000000e+00 : f32
    %20 = vector.broadcast %cst_17 : f32 to vector<8x4xf32>
    %21 = arith.subf %20, %19 : vector<8x4xf32>
    %22 = math.exp %21 : vector<8x4xf32>
    %cst_18 = arith.constant 1.000000e+00 : f32
    %23 = vector.broadcast %cst_18 : f32 to vector<8x4xf32>
    %24 = arith.addf %23, %22 : vector<8x4xf32>
    %cst_19 = arith.constant 1.000000e+00 : f32
    %25 = vector.broadcast %cst_19 : f32 to vector<8x4xf32>
    %26 = arith.divf %25, %24 : vector<8x4xf32>
    %c0_20 = arith.constant 0 : index
    %c0_21 = arith.constant 0 : index
    %27 = vector.load %arg8[%c0_20, %c0_21] : memref<8x4xf32, #tpu.memory_space<vmem>>, vector<8x4xf32>
    tpu.vector_store %arg8[%c0_20, %c0_21], %26 {strides = array<i32>} : memref<8x4xf32, #tpu.memory_space<vmem>>, vector<8x4xf32>,
    return
  }
  func.func @transform_0(%arg0: i32) -> (i32, i32) {
    %c0_i32 = arith.constant 0 : i32
    %c0_i32_0 = arith.constant 0 : i32
    return %arg0, %c0_i32 : i32, i32
  }
  func.func @transform_1(%arg0: i32) -> (i32, i32) {
    %c0_i32 = arith.constant 0 : i32
    %c0_i32_0 = arith.constant 0 : i32
    %c0_i32_1 = arith.constant 0 : i32
    return %c0_i32, %c0_i32_0 : i32, i32
  }
  func.func @transform_2(%arg0: i32) -> (i32, i32) {
    %c0_i32 = arith.constant 0 : i32
    %c0_i32_0 = arith.constant 0 : i32
    %c0_i32_1 = arith.constant 0 : i32
    return %c0_i32, %c0_i32_0 : i32, i32
  }
  func.func @transform_3(%arg0: i32) -> (i32, i32) {
    %c0_i32 = arith.constant 0 : i32
    %c0_i32_0 = arith.constant 0 : i32
    %c0_i32_1 = arith.constant 0 : i32
    return %c0_i32, %c0_i32_0 : i32, i32
  }
  func.func @transform_4(%arg0: i32) -> (i32, i32) {
    %c0_i32 = arith.constant 0 : i32
    %c0_i32_0 = arith.constant 0 : i32
    %c0_i32_1 = arith.constant 0 : i32
    return %c0_i32, %c0_i32_0 : i32, i32
  }
  func.func @transform_5(%arg0: i32) -> (i32, i32) {
    %c0_i32 = arith.constant 0 : i32
    %c0_i32_0 = arith.constant 0 : i32
    %c0_i32_1 = arith.constant 0 : i32
    return %c0_i32, %c0_i32_0 : i32, i32
  }
  func.func @transform_6(%arg0: i32) -> (i32, i32) {
    %c0_i32 = arith.constant 0 : i32
    %c0_i32_0 = arith.constant 0 : i32
    %c0_i32_1 = arith.constant 0 : i32
    return %c0_i32, %c0_i32_0 : i32, i32
  }
  func.func @transform_7(%arg0: i32) -> (i32, i32) {
    %c0_i32 = arith.constant 0 : i32
    %c0_i32_0 = arith.constant 0 : i32
    return %arg0, %c0_i32 : i32, i32
  }
}

</mosaic_0001>

<bundles_post_ra>
// kernel: tree_predictor.1
= control target key start
LH: loop header
LB: loop body
LE: loop exit
PB: predicated region body
PF: predicated region fallthrough
CT: control target
= control target key end

     0   :  { %v364_v0 = vmov 0.0   ;;  %vm365_vm0 = vmmov 0   ;;  %vm36_vm1 = vcmask 130048   ;;  %vm122_vm2 = vcmask 261120   ;;  %s463_s1 = inlined_call_operand.vmem [shape: f32[16,32], index: 1, kind: input, shape index: {}]   ;;  %s464_s0 = inlined_call_operand.vmem [shape: f32[8,16], index: 0, kind: input, shape index: {}]   ;;  %s465_s3 = inlined_call_operand.vmem [shape: f32[32,64], index: 3, kind: input, shape index: {}]   ;;  %s466_s5 = inlined_call_operand.vmem [shape: f32[64,4], index: 5, kind: input, shape index: {}]   ;;  %s467_s2 = inlined_call_operand.vmem [shape: f32[1,32], index: 2, kind: input, shape index: {}]   ;;  %s468_s4 = inlined_call_operand.vmem [shape: f32[1,64], index: 4, kind: input, shape index: {}]   ;;  %s469_s6 = inlined_call_operand.vmem [shape: f32[1,4], index: 6, kind: input, shape index: {}]   ;;  %s470_s7 = inlined_call_operand.vmem [shape: f32[8,4], index: 7, kind: output, shape index: {}]  }
   0x1   :  { %321 = vmatprep.subr.mxu1 %v364_v0  ;;  %v28_v1 = vld [vmem:[%s463_s1 + $0x8] sm:$0xff]  ;;  %v27_v2 = vld [vmem:[%s463_s1] sm:$0xff]  ;;  %325 = vmatprep.mubr.msk.f32.mxu1 %vm365_vm0, %v364_v0  ;;  %v114_v4 = vld [vmem:[%s465_s3 + $0x18] sm:$0xff]  ;;  %vm212_vm3 = vcmask 523264   ;;  %vm292_vm4 = vcmask 31744  }
   0x2   :  { %322 = vmatpush3.msra.mxu1 %v28_v1  ;;  %v26_v3 = vld [vmem:[%s464_s0] sm:$0xff]  ;;  %339 = vmatprep.subr.mxu0 %v364_v0  ;;  %v113_v5 = vld [vmem:[%s465_s3 + $0x10] sm:$0xff]  ;;  %v112_v6 = vld [vmem:[%s465_s3 + $0x8] sm:$0xff] }
   0x3   :  { %323 = vmatprep.subr.mxu1 %v364_v0  ;;  %355 = vmatprep.mubr.msk.f32.mxu0 %vm365_vm0, %v364_v0  ;;  %v111_v7 = vld [vmem:[%s465_s3] sm:$0xff]  ;;  %v204_v8 = vld [vmem:[%s466_s5 + $0x38] sm:$0xff]  ;;  %v203_v9 = vld [vmem:[%s466_s5 + $0x30] sm:$0xff] }
   0x4   :  { %324 = vmatpush3.msra.mxu1 %v27_v2  ;;  %340 = vmatpush3.msra.mxu0 %v204_v8  ;;  %v202_v10 = vld [vmem:[%s466_s5 + $0x28] sm:$0xff]  ;;  %v201_v11 = vld [vmem:[%s466_s5 + $0x20] sm:$0xff]  ;;  %v200_v12 = vld [vmem:[%s466_s5 + $0x18] sm:$0xff] }
   0x5   :  { %326 = vmatmul.mubr.msk.f32.vlgmr.msra.gmra.mxu1 %vm36_vm1, %v26_v3  ;;  %328 = vmatprep.subr.mxu1 %v364_v0  ;;  %v298_v13 = vld [vmem:[%s467_s2] ss:$0 sm:$0xff]  ;;  %v199_v18 = vld [vmem:[%s466_s5 + $0x10] sm:$0xff]  ;;  %v198_v19 = vld [vmem:[%s466_s5 + $0x8] sm:$0xff] }
   0x6   :  { %329 = vmatpush3.msra.mxu1 %v114_v4  ;;  %336 = vmatprep.mubr.msk.f32.mxu1 %vm365_vm0, %v364_v0  ;;  %v197_v20 = vld [vmem:[%s466_s5] sm:$0xff] }
   0x7   :  { %330 = vmatprep.subr.mxu1 %v364_v0  ;;  %341 = vmatprep.subr.mxu0 %v364_v0  ;;  %v300_v21 = vld [vmem:[%s468_s4] ss:$0 sm:$0xff] }
   0x8   :  { %331 = vmatpush3.msra.mxu1 %v113_v5  ;;  %342 = vmatpush3.msra.mxu0 %v203_v9  ;;  %v302_v26 = vld [vmem:[%s469_s6] ss:$0 sm:$0xff] }
   0x9   :  { %332 = vmatprep.subr.mxu1 %v364_v0  ;;  %343 = vmatprep.subr.mxu0 %v364_v0 }
   0xa   :  { %333 = vmatpush3.msra.mxu1 %v112_v6  ;;  %344 = vmatpush3.msra.mxu0 %v202_v10 }
   0xb   :  { %334 = vmatprep.subr.mxu1 %v364_v0  ;;  %345 = vmatprep.subr.mxu0 %v364_v0 }
   0xc   :  { %335 = vmatpush3.msra.mxu1 %v111_v7  ;;  %346 = vmatpush3.msra.mxu0 %v201_v11 }
   0xd   :  { %347 = vmatprep.subr.mxu0 %v364_v0 }
   0xe   :  { %348 = vmatpush3.msra.mxu0 %v200_v12 }
   0xf   :  { %349 = vmatprep.subr.mxu0 %v364_v0 }
  0x10   :  { %350 = vmatpush3.msra.mxu0 %v199_v18 }
  0x11   :  { %351 = vmatprep.subr.mxu0 %v364_v0 }
  0x12   :  { %352 = vmatpush3.msra.mxu0 %v198_v19 }
  0x13   :  { %353 = vmatprep.subr.mxu0 %v364_v0 }
  0x14   :  { %354 = vmatpush3.msra.mxu0 %v197_v20 }
  0xc5   :  { %v106_v14 = vpop.f32.mrf.mxu1 }
  0xc6   :  { %v107_v15 = vadd.f32 %v298_v13, %v106_v14 }
  0xc7   :  { %v327_v16 = vpop.f32.mrf.mxu1 }
  0xc8   :  { %v110_v17 = vmax.f32 %v107_v15, 0.0 }
  0xca   :  { %337 = vmatmul.mubr.msk.f32.vlgmr.msra.gmra.mxu1 %vm122_vm2, %v110_v17 }
 0x18a   :  { %v192_v22 = vpop.f32.mrf.mxu1 }
 0x18b   :  { %v193_v23 = vadd.f32 %v300_v21, %v192_v22 }
 0x18c   :  { %v338_v24 = vpop.f32.mrf.mxu1 }
 0x18d   :  { %v196_v25 = vmax.f32 %v193_v23, 0.0 }
 0x18f   :  { %356 = vmatmul.mubr.msk.f32.vlgmr.msra.gmra.mxu0 %vm212_vm3, %v196_v25 }
 0x24f   :  { %v282_v27 = vpop.f32.mrf.mxu0 }
 0x250   :  { %v283_v28 = vadd.f32 %v302_v26, %v282_v27 }
 0x251   :  { %v357_v29 = vpop.f32.mrf.mxu0 }
 0x252   :  { %v286_v30 = vsub.f32 0.0, %v283_v28 }
 0x254   :  { %v287_v31 = vmul.f32 1.442695, %v286_v30 }
 0x256   :  { %360 = vpow2.f32 %v287_v31 }
 0x263   :  { %v361_v32 = vpop.eup %360 }
 0x264   :  { %v289_v33 = vadd.f32 1.0, %v361_v32 }
 0x266   :  { %362 = vrcp.f32 %v289_v33 }
 0x273   :  { %v363_v34 = vpop.eup %362 }
 0x274   :  { %293 = vst.msk [vmem:[%s470_s7] sm:$0xff] %vm292_vm4, %v363_v34 }

</bundles_post_ra>
